<compile_context>
chip_gen: v7x
topology: tpu7x:2x2x1
jax: 0.10.0
libtpu: 0.0.40
codegen_flags: <defaults>
</compile_context>

<pallas_src>
import functools

import jax
import jax.numpy as jnp
from jax.experimental import pallas as pl
from jax.experimental.pallas import tpu as pltpu


def _supcon_kernel(feat_ref, bT_ref, lab_col_ref, lab_row_ref, out_ref, *, eps, tm):
    i = pl.program_id(0)

    # --- LHS tile: row-L2-normalize in f32 (F.normalize, eps=1e-12) ----------
    f = feat_ref[...]                                                   # (TM, D) f32
    row_norm = jnp.maximum(jnp.sqrt(jnp.sum(f * f, axis=1, keepdims=True)), 1e-12)
    a = f / row_norm                                                    # (TM, D) f32

    # --- similarity tile: (TM, N) = a @ bT (bT is pre-scaled, resident) ------
    adc = jax.lax.dot_general(
        a, bT_ref[...], (((1,), (0,)), ((), ())),
        preferred_element_type=jnp.float32)                             # (TM, N) f32
    n = adc.shape[1]

    logits = adc - jnp.max(adc, axis=1, keepdims=True)

    # --- boolean masks (single per-tile iota, no full-size f32 temporaries) --
    col_ids = jax.lax.broadcasted_iota(jnp.int32, (tm, n), 1)           # (TM, N)
    row_ids = i * tm + jax.lax.broadcasted_iota(jnp.int32, (tm, 1), 0)  # (TM, 1) global id
    not_self = col_ids != row_ids                                       # bool
    pos = jnp.logical_and(lab_col_ref[...] == lab_row_ref[...], not_self)

    # --- fused reductions: sum(pos*log_prob) = sum(pos*logits) - cnt*log(denom)
    denom = jnp.sum(jnp.where(not_self, jnp.exp(logits), 0.0),
                    axis=1, keepdims=True) + eps                        # (TM, 1)
    pos_logit_sum = jnp.sum(jnp.where(pos, logits, 0.0),
                            axis=1, keepdims=True)                      # (TM, 1)
    cnt = jnp.sum(pos.astype(jnp.float32), axis=1, keepdims=True)       # (TM, 1)

    # per-anchor mean_log_prob_pos (NaN if an anchor has no positives, as in torch)
    out_ref[...] = pos_logit_sum / cnt - jnp.log(denom)


def supcon_loss(features, labels, temperature, eps=1e-8):
    """Pallas SupConLoss forward. features: [bsz, n_views, ...], labels: [bsz]."""
    bsz, views = features.shape[0], features.shape[1]
    feat = features.reshape(bsz, views, -1).astype(jnp.float32)
    d0 = feat.shape[-1]
    N = views * bsz

    # torch.cat(torch.unbind(features, dim=1), dim=0)  -> view-major stacking
    full = jnp.transpose(feat, (1, 0, 2)).reshape(N, d0)

    # Pad feature dim to a lane-dense multiple of 128 (zeros contribute 0 to
    # norms and dot products -> no semantic change).
    D = max(128, ((d0 + 127) // 128) * 128)
    if D != d0:
        full = jnp.pad(full, ((0, 0), (0, D - d0)))

    # torch.exp(t).clamp(100) == max(exp(t), 100)
    scale = jnp.maximum(
        jnp.exp(jnp.asarray(temperature, jnp.float32).reshape(())), 100.0)

    # F.normalize(full.T) == per-feature-dim normalization; it needs the whole
    # array (incompatible with row tiling), so build the resident RHS here:
    # column-normalize, fold the scale in, pre-transpose to (D, N).
    col_norm = jnp.maximum(
        jnp.sqrt(jnp.sum(full * full, axis=0, keepdims=True)), 1e-12)   # (1, D)
    bT = (full * (scale / col_norm)).T                                  # (D, N) f32

    lab_full = jnp.tile(labels.reshape(-1).astype(jnp.int32), views)    # (N,)
    lab_row = lab_full.reshape(1, N)

    # TM=128 suits the MXU on all generations; live VMEM per step is O(TM*N + D*N).
    TM = 128 if N >= 128 else N
    num_tiles = pl.cdiv(N, TM)
    n_pad = num_tiles * TM

    # Pad the anchor-side arrays to a whole number of tiles (padded rows are
    # dropped in the final slice; their labels are -1 so they match nothing).
    feat_a = full
    lab_col = lab_full.reshape(N, 1)
    if n_pad != N:
        feat_a = jnp.pad(feat_a, ((0, n_pad - N), (0, 0)))
        lab_col = jnp.pad(lab_col, ((0, n_pad - N), (0, 0)), constant_values=-1)

    out = pl.pallas_call(
        functools.partial(_supcon_kernel, eps=eps, tm=TM),
        out_shape=jax.ShapeDtypeStruct((n_pad, 1), jnp.float32),
        grid=(num_tiles,),
        in_specs=[
            pl.BlockSpec((TM, D), lambda i: (i, 0)),   # anchor feature tile (pipelined)
            pl.BlockSpec((D, N), lambda i: (0, 0)),    # resident, pre-transposed RHS
            pl.BlockSpec((TM, 1), lambda i: (i, 0)),   # anchor labels (column)
            pl.BlockSpec((1, N), lambda i: (0, 0)),    # all labels (row)
        ],
        out_specs=pl.BlockSpec((TM, 1), lambda i: (i, 0)),
        compiler_params=pltpu.CompilerParams(
            dimension_semantics=("parallel",),         # no cross-tile accumulator
            vmem_limit_bytes=32 * 1024 * 1024,         # safe on v5e/v6e/v7x
        ),
    )(feat_a, bT, lab_col, lab_row)

    mean_log_prob_pos = out[:N, 0]                     # drop padded anchor rows
    return -jnp.mean(mean_log_prob_pos)


def supcon_loss_ref(features, labels, temperature, eps=1e-8):
    """Pure-JAX f32 reference mirroring the PyTorch module exactly."""
    bsz, views = features.shape[0], features.shape[1]
    feat = features.reshape(bsz, views, -1).astype(jnp.float32)
    N = views * bsz
    full = jnp.transpose(feat, (1, 0, 2)).reshape(N, -1)                # (N, D)

    # F.normalize(full)   -> row-normalized (N, D)
    row = full / jnp.maximum(jnp.linalg.norm(full, axis=1, keepdims=True), 1e-12)
    # F.normalize(full.T) -> (D, N), each row (= feature dim) normalized over N
    fullT = full.T
    colT = fullT / jnp.maximum(jnp.linalg.norm(fullT, axis=1, keepdims=True), 1e-12)

    scale = jnp.maximum(
        jnp.exp(jnp.asarray(temperature, jnp.float32).reshape(())), 100.0)
    adc = jnp.dot(row, colT, precision=jax.lax.Precision.HIGHEST) * scale  # (N, N)

    logits = adc - jnp.max(adc, axis=1, keepdims=True)
    lab_full = jnp.tile(labels.reshape(-1), views)
    mask = (lab_full[:, None] == lab_full[None, :]).astype(jnp.float32)
    logits_mask = 1.0 - jnp.eye(N, dtype=jnp.float32)
    mask = mask * logits_mask
    exp_logits = jnp.exp(logits) * logits_mask
    log_prob = logits - jnp.log(jnp.sum(exp_logits, axis=1, keepdims=True) + eps)
    mean_log_prob_pos = jnp.sum(mask * log_prob, axis=1) / jnp.sum(mask, axis=1)
    return -jnp.mean(mean_log_prob_pos)


if __name__ == "__main__":
    key = jax.random.PRNGKey(0)
    k1, k2 = jax.random.split(key)

    bsz, views, h, w = 8, 2, 4, 8            # features flatten to D0 = 32, N = 16
    features = jax.random.normal(k1, (bsz, views, h, w), dtype=jnp.float32)
    labels = jax.random.randint(k2, (bsz,), 0, 3, dtype=jnp.int32)

    # Deterministic parameter init (matches nn.Parameter(torch.tensor([0.07])))
    temperature = jnp.array([0.07], dtype=jnp.float32)

    loss = jax.block_until_ready(jax.jit(supcon_loss)(features, labels, temperature))
    ref = jax.block_until_ready(supcon_loss_ref(features, labels, temperature))

    assert jnp.isfinite(loss), loss
    assert jnp.allclose(loss, ref, rtol=2e-2, atol=1e-2), (loss, ref)

    print("KERNEL_OK")
</pallas_src>

<mosaic_0001>
module attributes {stable_mosaic.version = 11 : i64} {
  func.func @_supcon_kernel(%arg0: i32, %arg1: memref<16x128xf32, #tpu.memory_space<vmem>>, %arg2: memref<128x16xf32, #tpu.memory_space<vmem>>, %arg3: memref<16x1xi32, #tpu.memory_space<vmem>>, %arg4: memref<1x16xi32, #tpu.memory_space<vmem>>, %arg5: memref<16x1xf32, #tpu.memory_space<vmem>>) attributes {dimension_semantics = [#tpu.dimension_semantics<parallel>], iteration_bounds = array<i64: 1>, scalar_prefetch = 0 : i64, scratch_operands = 0 : i64, tpu.core_type = #tpu.core_type<tc>, window_params = [{transform_indices = @transform_0, window_bounds = array<i64: 16, 128>}, {pipeline_mode = #tpu.pipeline_mode<synchronous>, transform_indices = @transform_1, window_bounds = array<i64: 128, 16>}, {transform_indices = @transform_2, window_bounds = array<i64: 16, 1>}, {pipeline_mode = #tpu.pipeline_mode<synchronous>, transform_indices = @transform_3, window_bounds = array<i64: 1, 16>}, {transform_indices = @transform_4, window_bounds = array<i64: 16, 1>}]} {
    %c0 = arith.constant 0 : index
    %c0_0 = arith.constant 0 : index
    %0 = vector.load %arg1[%c0, %c0_0] : memref<16x128xf32, #tpu.memory_space<vmem>>, vector<16x128xf32>
    %1 = arith.mulf %0, %0 : vector<16x128xf32>
    %cst = arith.constant dense<0.000000e+00> : vector<16xf32>
    %2 = vector.multi_reduction <add>, %1, %cst [1] : vector<16x128xf32> to vector<16xf32>
    %3 = vector.shape_cast %2 : vector<16xf32> to vector<16x1xf32>
    %4 = math.sqrt %3 : vector<16x1xf32>
    %cst_1 = arith.constant 9.99999996E-13 : f32
    %5 = vector.broadcast %cst_1 : f32 to vector<16x1xf32>
    %6 = arith.maximumf %4, %5 : vector<16x1xf32>
    %7 = vector.broadcast %6 : vector<16x1xf32> to vector<16x128xf32>
    %8 = arith.divf %0, %7 : vector<16x128xf32>
    %c0_2 = arith.constant 0 : index
    %c0_3 = arith.constant 0 : index
    %9 = vector.load %arg2[%c0_2, %c0_3] : memref<128x16xf32, #tpu.memory_space<vmem>>, vector<128x16xf32>
    %cst_4 = arith.constant dense<0.000000e+00> : vector<16x16xf32>
    %10 = tpu.matmul %8, %9, %cst_4 {dimension_numbers = #tpu.dot_dimension_numbers<[1], [0], [0], [1], [0, 0, 1, 1], [], []>} : vector<16x128xf32>, vector<128x16xf32>, vector<16x16xf32> -> vector<16x16xf32>
    %cst_5 = arith.constant dense<0xFF800000> : vector<16xf32>
    %11 = vector.multi_reduction <maximumf>, %10, %cst_5 [1] : vector<16x16xf32> to vector<16xf32>
    %12 = vector.shape_cast %11 : vector<16xf32> to vector<16x1xf32>
    %13 = vector.broadcast %12 : vector<16x1xf32> to vector<16x16xf32>
    %14 = arith.subf %10, %13 : vector<16x16xf32>
    %15 = tpu.iota {dimensions = array<i32: 1>} : vector<16x16xi32>
    %c16_i32 = arith.constant 16 : i32
    %16 = arith.muli %arg0, %c16_i32 : i32
    %17 = tpu.iota {dimensions = array<i32: 0>} : vector<16x1xi32>
    %18 = vector.broadcast %16 : i32 to vector<16x1xi32>
    %19 = arith.addi %18, %17 : vector<16x1xi32>
    %20 = vector.broadcast %19 : vector<16x1xi32> to vector<16x16xi32>
    %21 = arith.cmpi ne, %15, %20 : vector<16x16xi32>
    %c0_6 = arith.constant 0 : index
    %c0_7 = arith.constant 0 : index
    %22 = vector.load %arg3[%c0_6, %c0_7] : memref<16x1xi32, #tpu.memory_space<vmem>>, vector<16x1xi32>
    %c0_8 = arith.constant 0 : index
    %c0_9 = arith.constant 0 : index
    %23 = vector.load %arg4[%c0_8, %c0_9] : memref<1x16xi32, #tpu.memory_space<vmem>>, vector<1x16xi32>
    %24 = vector.broadcast %22 : vector<16x1xi32> to vector<16x16xi32>
    %25 = vector.broadcast %23 : vector<1x16xi32> to vector<16x16xi32>
    %26 = arith.cmpi eq, %24, %25 : vector<16x16xi32>
    %27 = arith.andi %26, %21 : vector<16x16xi1>
    %28 = math.exp %14 : vector<16x16xf32>
    %cst_10 = arith.constant 0.000000e+00 : f32
    %29 = vector.broadcast %cst_10 : f32 to vector<16x16xf32>
    %30 = arith.select %21, %28, %29 : vector<16x16xi1>, vector<16x16xf32>
    %cst_11 = arith.constant dense<0.000000e+00> : vector<16xf32>
    %31 = vector.multi_reduction <add>, %30, %cst_11 [1] : vector<16x16xf32> to vector<16xf32>
    %32 = vector.shape_cast %31 : vector<16xf32> to vector<16x1xf32>
    %cst_12 = arith.constant 9.99999993E-9 : f32
    %33 = vector.broadcast %cst_12 : f32 to vector<16x1xf32>
    %34 = arith.addf %32, %33 : vector<16x1xf32>
    %cst_13 = arith.constant 0.000000e+00 : f32
    %35 = vector.broadcast %cst_13 : f32 to vector<16x16xf32>
    %36 = arith.select %27, %14, %35 : vector<16x16xi1>, vector<16x16xf32>
    %cst_14 = arith.constant dense<0.000000e+00> : vector<16xf32>
    %37 = vector.multi_reduction <add>, %36, %cst_14 [1] : vector<16x16xf32> to vector<16xf32>
    %38 = vector.shape_cast %37 : vector<16xf32> to vector<16x1xf32>
    %39 = arith.extui %27 : vector<16x16xi1> to vector<16x16xi32>
    %40 = arith.sitofp %39 : vector<16x16xi32> to vector<16x16xf32>
    %cst_15 = arith.constant dense<0.000000e+00> : vector<16xf32>
    %41 = vector.multi_reduction <add>, %40, %cst_15 [1] : vector<16x16xf32> to vector<16xf32>
    %42 = vector.shape_cast %41 : vector<16xf32> to vector<16x1xf32>
    %43 = arith.divf %38, %42 : vector<16x1xf32>
    %44 = math.log %34 : vector<16x1xf32>
    %45 = arith.subf %43, %44 : vector<16x1xf32>
    %c0_16 = arith.constant 0 : index
    %c0_17 = arith.constant 0 : index
    %46 = vector.load %arg5[%c0_16, %c0_17] : memref<16x1xf32, #tpu.memory_space<vmem>>, vector<16x1xf32>
    tpu.vector_store %arg5[%c0_16, %c0_17], %45 {strides = array<i32>} : memref<16x1xf32, #tpu.memory_space<vmem>>, vector<16x1xf32>,
    return
  }
  func.func @transform_0(%arg0: i32) -> (i32, i32) {
    %c0_i32 = arith.constant 0 : i32
    %c0_i32_0 = arith.constant 0 : i32
    return %arg0, %c0_i32 : i32, i32
  }
  func.func @transform_1(%arg0: i32) -> (i32, i32) {
    %c0_i32 = arith.constant 0 : i32
    %c0_i32_0 = arith.constant 0 : i32
    %c0_i32_1 = arith.constant 0 : i32
    return %c0_i32, %c0_i32_0 : i32, i32
  }
  func.func @transform_2(%arg0: i32) -> (i32, i32) {
    %c0_i32 = arith.constant 0 : i32
    %c0_i32_0 = arith.constant 0 : i32
    return %arg0, %c0_i32 : i32, i32
  }
  func.func @transform_3(%arg0: i32) -> (i32, i32) {
    %c0_i32 = arith.constant 0 : i32
    %c0_i32_0 = arith.constant 0 : i32
    %c0_i32_1 = arith.constant 0 : i32
    return %c0_i32, %c0_i32_0 : i32, i32
  }
  func.func @transform_4(%arg0: i32) -> (i32, i32) {
    %c0_i32 = arith.constant 0 : i32
    %c0_i32_0 = arith.constant 0 : i32
    return %arg0, %c0_i32 : i32, i32
  }
}

</mosaic_0001>

<bundles_post_ra>
// kernel: tile.9
= control target key start
LH: loop header
LB: loop body
LE: loop exit
PB: predicated region body
PF: predicated region fallthrough
CT: control target
= control target key end

     0   :  { %s22_s0 = inlined_call_operand.vmem [shape: s32[8], index: 0, kind: input, shape index: {}]   ;;  %s23_s1 = inlined_call_operand.vmem [shape: s32[2,8], index: 1, kind: output, shape index: {}]  }
   0x1   :  { %v4_v0 = vld [vmem:[%s22_s0] ss:$0 sm:$0xff] }
   0x2   :  { %5 = vst [vmem:[%s23_s1] sm:$0x3] %v4_v0 }

// kernel: tile.0
= control target key start
LH: loop header
LB: loop body
LE: loop exit
PB: predicated region body
PF: predicated region fallthrough
CT: control target
= control target key end

     0   :  { %s66_s8 = smov 125   ;;  %vm7_vm0 = vcmask 7168   ;;  %s67_s11 = smov 126   ;;  %s117_s0 = inlined_call_operand.vmem [shape: s32[2,8], index: 0, kind: input, shape index: {}]   ;;  %s118_s1 = inlined_call_operand.vmem [shape: s32[16,1], index: 1, kind: output, shape index: {}]  }
   0x1   :  { %v4_v0 = vld [vmem:[%s117_s0] sm:$0x3]  ;;  %s65_s0 = smov 127   ;;  %s68_s12 = smov 124  }
   0x2   :  { %5 = vst [vmem:[#allocation0] sm:$0x3] %v4_v0  ;;  %s69_s13 = smov 123   ;;  %s70_s14 = smov 122  }
   0x3   :  { %s71_s15 = smov 121  }
   0x9   :  { %v9_v1 = vld [vmem:[#allocation0] sm:$0x3]  }
   0xa   :  { %v21_v2 = vld [vmem:[#allocation0] sm:$0x3]   ;;  %10 = vrot.lane.b32.xlu0 %v9_v1, %s65_s0 }
   0xb   :  { %22 = vrot.lane.b32.xlu1 %v21_v2, %s66_s8  ;;  %v15_v3 = vld [vmem:[#allocation0] sm:$0x3]  }
   0xc   :  { %v27_v4 = vld [vmem:[#allocation0] sm:$0x3]  }
   0xd   :  { %v6_v5 = vld [vmem:[#allocation0] sm:$0x3]  }
   0xe   :  { %8 = vst.msk [vmem:[%s118_s1] ss:$8 sm:$0x3] %vm7_vm0, %v6_v5   ;;  %16 = vrot.lane.b32.xlu0 %v15_v3, %s67_s11  ;;  %v33_v6 = vld [vmem:[#allocation0] sm:$0x3]  }
   0xf   :  { %28 = vrot.lane.b32.xlu1 %v27_v4, %s68_s12  ;;  %v39_v7 = vld [vmem:[#allocation0] sm:$0x3]  }
  0x10   :  { %v45_v8 = vld [vmem:[#allocation0] sm:$0x3]  }
  0x12   :  { %34 = vrot.lane.b32.xlu0 %v33_v6, %s69_s13 }
  0x13   :  { %40 = vrot.lane.b32.xlu1 %v39_v7, %s70_s14 }
  0x16   :  { %46 = vrot.lane.b32.xlu0 %v45_v8, %s71_s15 }
  0x7c   :  { %v11_v9 = vpop.permute.xlu0 %10  }
  0x7d   :  { %v23_v10 = vpop.permute.xlu1 %22   ;;  %51 = vst.msk [vmem:[%s118_s1 + $0x1] ss:$8 sm:$0x3] %vm7_vm0, %v11_v9  }
  0x7e   :  { %53 = vst.msk [vmem:[%s118_s1 + $0x3] ss:$8 sm:$0x3] %vm7_vm0, %v23_v10  }
  0x80   :  { %v17_v11 = vpop.permute.xlu0 %16  }
  0x81   :  { %v29_v12 = vpop.permute.xlu1 %28   ;;  %52 = vst.msk [vmem:[%s118_s1 + $0x2] ss:$8 sm:$0x3] %vm7_vm0, %v17_v11  }
  0x82   :  { %54 = vst.msk [vmem:[%s118_s1 + $0x4] ss:$8 sm:$0x3] %vm7_vm0, %v29_v12  }
  0x84   :  { %v35_v13 = vpop.permute.xlu0 %34  }
  0x85   :  { %v41_v14 = vpop.permute.xlu1 %40   ;;  %55 = vst.msk [vmem:[%s118_s1 + $0x5] ss:$8 sm:$0x3] %vm7_vm0, %v35_v13  }
  0x86   :  { %56 = vst.msk [vmem:[%s118_s1 + $0x6] ss:$8 sm:$0x3] %vm7_vm0, %v41_v14  }
  0x88   :  { %v47_v15 = vpop.permute.xlu0 %46  }
  0x89   :  { %57 = vst.msk [vmem:[%s118_s1 + $0x7] ss:$8 sm:$0x3] %vm7_vm0, %v47_v15  }

// kernel: tile.10
= control target key start
LH: loop header
LB: loop body
LE: loop exit
PB: predicated region body
PF: predicated region fallthrough
CT: control target
= control target key end

     0   :  { %vm7_vm0 = vcmask 64512   ;;  %vm13_vm1 = vcmask 130112   ;;  %s39_s0 = inlined_call_operand.vmem [shape: s32[2,8], index: 0, kind: input, shape index: {}]   ;;  %s40_s1 = inlined_call_operand.vmem [shape: s32[1,16], index: 1, kind: output, shape index: {}]  }
   0x1   :  { %v4_v0 = vld [vmem:[%s39_s0] sm:$0x3]  ;;  %s22_s0 = smov 8  }
   0x2   :  { %5 = vst [vmem:[#allocation1] sm:$0x3] %v4_v0 }
   0x9   :  { %v10_v1 = vld [vmem:[#allocation1 + $0x1] sm:$0x1]   ;;  %v6_v2 = vld [vmem:[#allocation1] sm:$0x1]  }
   0xa   :  { %11 = vrot.lane.b32.xlu0 %v10_v1, %s22_s0  ;;  %8 = vst.msk [vmem:[#allocation0] sm:$0x1] %vm7_vm0, %v6_v2  }
  0x7c   :  { %v12_v3 = vpop.permute.xlu0 %11  }
  0x7d   :  { %14 = vst.msk [vmem:[#allocation0] sm:$0x1] %vm13_vm1, %v12_v3  }
  0x84   :  { %v18_v4 = vld [vmem:[#allocation0] sm:$0x1] }
  0x85   :  { %20 = vst [vmem:[%s40_s1] sm:$0x1] %v18_v4 }

// kernel: supcon_loss.1
= control target key start
LH: loop header
LB: loop body
LE: loop exit
PB: predicated region body
PF: predicated region fallthrough
CT: control target
= control target key end

     0   :  { %v334_v46 = vmov 0   ;;  %vm136_vm4 = vcmask 130048   ;;  %v145_v52 = vlaneseq  ;;  %v335_v60 = vmov 0.0   ;;  %s468_s0 = inlined_call_operand.vmem [shape: f32[16,128], index: 0, kind: input, shape index: {}]   ;;  %s469_s1 = inlined_call_operand.vmem [shape: f32[128,16], index: 1, kind: input, shape index: {}]   ;;  %s470_s2 = inlined_call_operand.vmem [shape: s32[16,1], index: 2, kind: input, shape index: {}]   ;;  %s471_s3 = inlined_call_operand.vmem [shape: s32[1,16], index: 3, kind: input, shape index: {}]   ;;  %s472_s4 = inlined_call_operand.vmem [shape: f32[16,1], index: 4, kind: output, shape index: {}]  }
   0x1   :  { %v364_v0 = vld [vmem:[%s468_s0] sm:$0xff]  ;;  %v369_v1 = vld [vmem:[%s468_s0 + $0x8] sm:$0xff]  ;;  %v47_v7 = vld [vmem:[%s469_s1 + $0x10] sm:$0xff]  ;;  %312 = vset.pattern.permute.xlu0 %v334_v46  ;;  %313 = vset.pattern.permute.xlu1 %v334_v46  ;;  %vm215_vm11 = vcmask 7168  }
   0x2   :  { %v19_v2 = vmul.f32 %v364_v0, %v364_v0  ;;  %v20_v3 = vmul.f32 %v369_v1, %v369_v1  ;;  %v45_v4 = vld [vmem:[%s469_s1] sm:$0xff]  ;;  %v46_v5 = vld [vmem:[%s469_s1 + $0x8] sm:$0xff]  ;;  %v48_v8 = vld [vmem:[%s469_s1 + $0x18] sm:$0xff]  ;;  %v149_v54 = vshrl.u32 %v145_v52, 7  ;;  %v146_v55 = vand.u32 127, %v145_v52 }
   0x3   :  { %v278_v6 = vpack.c.bf16 %v46_v5, %v45_v4  ;;  %v282_v9 = vpack.c.bf16 %v48_v8, %v47_v7  ;;  %v49_v10 = vld [vmem:[%s469_s1 + $0x20] sm:$0xff]  ;;  %v50_v11 = vld [vmem:[%s469_s1 + $0x28] sm:$0xff]  ;;  %v51_v13 = vld [vmem:[%s469_s1 + $0x30] sm:$0xff] }
   0x4   :  { %21 = vadd.xlane.f32.xlu0 %v19_v2  ;;  %v286_v12 = vpack.c.bf16 %v50_v11, %v49_v10  ;;  %v52_v14 = vld [vmem:[%s469_s1 + $0x38] sm:$0xff]  ;;  %v53_v16 = vld [vmem:[%s469_s1 + $0x40] sm:$0xff]  ;;  %v54_v17 = vld [vmem:[%s469_s1 + $0x48] sm:$0xff]  ;;  %v150_v56 = vadd.s32 8, %v149_v54  ;;  %vm154_vm6 = vcmp.ne.s32.totalorder %v146_v55, %v149_v54 }
   0x5   :  { %279 = vmatprep.subr.bf16.mxu0 %v278_v6  ;;  %v290_v15 = vpack.c.bf16 %v52_v14, %v51_v13  ;;  %v294_v18 = vpack.c.bf16 %v54_v17, %v53_v16  ;;  %v55_v19 = vld [vmem:[%s469_s1 + $0x50] sm:$0xff]  ;;  %v56_v20 = vld [vmem:[%s469_s1 + $0x58] sm:$0xff]  ;;  %v57_v22 = vld [vmem:[%s469_s1 + $0x60] sm:$0xff] }
   0x6   :  { %281 = vmatpush3.bf16.msra.mxu0 %v278_v6  ;;  %v298_v21 = vpack.c.bf16 %v56_v20, %v55_v19  ;;  %v58_v23 = vld [vmem:[%s469_s1 + $0x68] sm:$0xff]  ;;  %v59_v24 = vld [vmem:[%s469_s1 + $0x70] sm:$0xff]  ;;  %v60_v26 = vld [vmem:[%s469_s1 + $0x78] sm:$0xff]  ;;  %vm155_vm5 = vcmp.ne.s32.totalorder %v146_v55, %v150_v56 }
   0x7   :  { %283 = vmatprep.subr.bf16.mxu0 %v282_v9  ;;  %v302_v25 = vpack.c.bf16 %v58_v23, %v57_v22  ;;  %v306_v27 = vpack.c.bf16 %v60_v26, %v59_v24  ;;  %v156_v47 = vld [vmem:[%s470_s2] sm:$0xff]  ;;  %v157_v53 = vld [vmem:[%s470_s2 + $0x8] sm:$0xff] }
   0x8   :  { %23 = vadd.xlane.f32.xlu0 %v20_v3  ;;  %v222_v57 = vld [vmem:[%s471_s3] ss:$0 sm:$0xff] }
   0xa   :  { %285 = vmatpush3.bf16.msra.mxu0 %v282_v9 }
   0xb   :  { %287 = vmatprep.subr.bf16.mxu0 %v286_v12 }
   0xe   :  { %289 = vmatpush3.bf16.msra.mxu0 %v286_v12 }
   0xf   :  { %291 = vmatprep.subr.bf16.mxu0 %v290_v15 }
  0x12   :  { %293 = vmatpush3.bf16.msra.mxu0 %v290_v15 }
  0x13   :  { %295 = vmatprep.subr.bf16.mxu0 %v294_v18 }
  0x16   :  { %297 = vmatpush3.bf16.msra.mxu0 %v294_v18 }
  0x17   :  { %299 = vmatprep.subr.bf16.mxu0 %v298_v21 }
  0x1a   :  { %301 = vmatpush3.bf16.msra.mxu0 %v298_v21 }
  0x1b   :  { %303 = vmatprep.subr.bf16.mxu0 %v302_v25 }
  0x1e   :  { %305 = vmatpush3.bf16.msra.mxu0 %v302_v25  ;;  %160 = vperm.xlu0 %312, %v156_v47  }
  0x1f   :  { %307 = vmatprep.subr.bf16.mxu0 %v306_v27 }
  0x22   :  { %309 = vmatpush3.bf16.msra.mxu0 %v306_v27 }
  0x91   :  { %v22_v28 = vpop.xlane.xlu0 %21 }
  0x92   :  { %314 = vrsqrt.f32 %v22_v28  ;;  %vm27_vm0 = vcmp.eq.f32.partialorder %v22_v28, inf  ;;  %v30_v32 = vand.u32 2147483648, %v22_v28  ;;  %vm29_vm1 = vcmp.eq.f32.partialorder %v22_v28, 0.0 }
  0x95   :  { %v24_v29 = vpop.xlane.xlu0 %23 }
  0x96   :  { %316 = vrsqrt.f32 %v24_v29  ;;  %vm34_vm2 = vcmp.eq.f32.partialorder %v24_v29, inf  ;;  %v37_v38 = vand.u32 2147483648, %v24_v29  ;;  %vm36_vm3 = vcmp.eq.f32.partialorder %v24_v29, 0.0 }
  0x9c   :  { %v315_v30 = vpop.eup %314 }
  0x9d   :  { %v26_v31 = vmul.f32 %v315_v30, %v22_v28  ;;  %v161_v58 = vpop.permute.xlu0 %160 }
  0x9e   :  { %vm169_vm7 = vcmp.eq.s32.totalorder %v161_v58, %v222_v57 }
  0x9f   :  { %v28_v33 = vsel %vm27_vm0, %v22_v28, %v26_v31  ;;  %vm437_vm8 = vmand %vm169_vm7, %vm154_vm6 }
  0xa0   :  { %v317_v34 = vpop.eup %316  ;;  %v31_v35 = vsel %vm29_vm1, %v30_v32, %v28_v33  ;;  %v223_v61 = vsel %vm437_vm8, 1.0, %v335_v60 }
  0xa1   :  { %v33_v36 = vmul.f32 %v317_v34, %v24_v29  ;;  %v39_v37 = vmax.f32 %v31_v35, 1e-12  ;;  %v199_v62 = vsel %vm136_vm4, %v223_v61, 0.0 }
  0xa3   :  { %v35_v39 = vsel %vm34_vm2, %v24_v29, %v33_v36  ;;  %318 = vrcp.f32 %v39_v37 }
  0xa4   :  { %v38_v40 = vsel %vm36_vm3, %v37_v38, %v35_v39 }
  0xa5   :  { %v40_v41 = vmax.f32 %v38_v40, 1e-12 }
  0xa7   :  { %320 = vrcp.f32 %v40_v41 }
  0xad   :  { %v319_v42 = vpop.eup %318 }
  0xae   :  { %v42_v43 = vmul.f32 %v319_v42, %v364_v0 }
  0xb0   :  { %275 = vmatprep.mubr.f32.mxu0 %v42_v43 }
  0xb1   :  { %v321_v44 = vpop.eup %320 }
  0xb2   :  { %v44_v45 = vmul.f32 %v321_v44, %v369_v1 }
  0xb4   :  { %276 = vmatmul.mubr.f32.vlgmr.msra.gmra.mrb[0].mxu0 %v44_v45 }
 0x187   :  { %v277_v48 = vpop.f32.mrb[0].mxu0 }
 0x188   :  { %v127_v49 = vpop.f32.mrb[1].mxu0  ;;  %v140_v50 = vsel %vm136_vm4, %v277_v48, -inf }
 0x189   :  { %141 = vmax.xlane.f32.xlu1 %v140_v50  ;;  %v137_v51 = vsel %vm136_vm4, %v127_v49, -inf }
 0x18d   :  { %138 = vmax.xlane.f32.xlu1 %v137_v51 }
 0x19e   :  { %163 = vperm.xlu1 %313, %v157_v53  }
 0x1c2   :  { %200 = vadd.xlane.f32.xlu1 %v199_v62 }
 0x216   :  { %v142_v63 = vpop.xlane.xlu1 %141 }
 0x217   :  { %v144_v0 = vsub.f32 %v277_v48, %v142_v63 }
 0x219   :  { %v175_v1 = vmul.f32 1.442695, %v144_v0 }
 0x21a   :  { %v139_v2 = vpop.xlane.xlu1 %138 }
 0x21b   :  { %322 = vpow2.f32 %v175_v1  ;;  %v143_v3 = vsub.f32 %v127_v49, %v139_v2 }
 0x21d   :  { %v173_v4 = vmul.f32 1.442695, %v143_v3  ;;  %v187_v16 = vsel %vm437_vm8, %v143_v3, 0.0 }
 0x21e   :  { %v164_v5 = vpop.permute.xlu1 %163  ;;  %v189_v17 = vsel %vm136_vm4, %v187_v16, 0.0 }
 0x21f   :  { %324 = vpow2.f32 %v173_v4  ;;  %vm170_vm9 = vcmp.eq.s32.totalorder %v164_v5, %v222_v57 }
 0x220   :  { %vm445_vm10 = vmand %vm170_vm9, %vm155_vm5 }
 0x221   :  { %v188_v7 = vsel %vm445_vm10, %v144_v0, 0.0  ;;  %v224_v13 = vsel %vm445_vm10, 1.0, %v335_v60 }
 0x222   :  { %v202_v15 = vsel %vm136_vm4, %v224_v13, 0.0  ;;  %v192_v18 = vsel %vm136_vm4, %v188_v7, 0.0 }
 0x225   :  { %v323_v8 = vpop.eup %322 }
 0x226   :  { %v178_v9 = vsel %vm155_vm5, %v323_v8, 0.0 }
 0x227   :  { %v182_v10 = vsel %vm136_vm4, %v178_v9, 0.0 }
 0x228   :  { %183 = vadd.xlane.f32.xlu0 %v182_v10 }
 0x229   :  { %v325_v11 = vpop.eup %324 }
 0x22a   :  { %v177_v12 = vsel %vm154_vm6, %v325_v11, 0.0 }
 0x22b   :  { %v179_v14 = vsel %vm136_vm4, %v177_v12, 0.0 }
 0x22c   :  { %180 = vadd.xlane.f32.xlu1 %v179_v14 }
 0x230   :  { %203 = vadd.xlane.f32.xlu1 %v202_v15 }
 0x234   :  { %190 = vadd.xlane.f32.xlu1 %v189_v17 }
 0x238   :  { %193 = vadd.xlane.f32.xlu1 %v192_v18 }
 0x24f   :  { %v201_v19 = vpop.xlane.xlu1 %200 }
 0x250   :  { %326 = vrcp.f32 %v201_v19 }
 0x25a   :  { %v327_v26 = vpop.eup %326 }
 0x2b5   :  { %v184_v20 = vpop.xlane.xlu0 %183 }
 0x2b6   :  { %v186_v21 = vadd.f32 1e-08, %v184_v20 }
 0x2b8   :  { %328 = vlog2.f32 %v186_v21 }
 0x2b9   :  { %v181_v22 = vpop.xlane.xlu1 %180 }
 0x2ba   :  { %v185_v23 = vadd.f32 1e-08, %v181_v22 }
 0x2bc   :  { %330 = vlog2.f32 %v185_v23 }
 0x2bd   :  { %v204_v24 = vpop.xlane.xlu1 %203 }
 0x2be   :  { %332 = vrcp.f32 %v204_v24 }
 0x2c1   :  { %v191_v25 = vpop.xlane.xlu1 %190 }
 0x2c2   :  { %v329_v27 = vpop.eup %328  ;;  %v206_v30 = vmul.f32 %v327_v26, %v191_v25 }
 0x2c3   :  { %v212_v33 = vmul.f32 0.6931472, %v329_v27 }
 0x2c5   :  { %v194_v32 = vpop.xlane.xlu1 %193 }
 0x2c6   :  { %v331_v28 = vpop.eup %330 }
 0x2c7   :  { %v210_v29 = vmul.f32 0.6931472, %v331_v28 }
 0x2c8   :  { %v333_v31 = vpop.eup %332 }
 0x2c9   :  { %v213_v34 = vsub.f32 %v206_v30, %v210_v29  ;;  %v208_v35 = vmul.f32 %v333_v31, %v194_v32 }
 0x2cb   :  { %216 = vst.msk [vmem:[%s472_s4] sm:$0xff] %vm215_vm11, %v213_v34  ;;  %v214_v36 = vsub.f32 %v208_v35, %v212_v33 }
 0x2cd   :  { %217 = vst.msk [vmem:[%s472_s4 + $0x8] sm:$0xff] %vm215_vm11, %v214_v36 }

</bundles_post_ra>
